<compile_context>
chip_gen: v7x
topology: tpu7x:2x2x1
jax: 0.10.0
libtpu: 0.0.40
codegen_flags: <defaults>
</compile_context>

<pallas_src>
import jax
import jax.numpy as jnp
from jax.experimental import pallas as pl
from jax.experimental.pallas import tpu as pltpu

LN_EPS = 1e-5  # nn.LayerNorm default


# ----------------------------------------------------------------------------
# Kernel
# ----------------------------------------------------------------------------
def _normalize_cols(h):
    """Mean/variance normalization over the feature axis (axis 0) of an
    (features, batch) tile.  gamma/beta are pre-folded into the next layer.

    One-pass variance clamped at 0 to avoid cancellation-induced negatives;
    rsqrt goes to the EUP (separate slot, effectively free)."""
    mu = jnp.mean(h, axis=0, keepdims=True)
    var = jnp.mean(h * h, axis=0, keepdims=True) - mu * mu
    var = jnp.maximum(var, 0.0)
    return (h - mu) * jax.lax.rsqrt(var + LN_EPS)


def odefunc_kernel(yT_ref,
                   w1_ref, b1_ref,
                   w2_ref, b2_ref,
                   w3_ref, b3_ref,
                   out_ref):
    # Hoisted, single reads of the small per-feature bias columns (f32).
    b1 = b1_ref[...]
    b2 = b2_ref[...]
    b3 = b3_ref[...]

    # ODE state stays f32 in HBM (solver precision); cast to the matmul
    # compute dtype in-kernel (VPU has plenty of slack at D=16).
    yT = yT_ref[...].astype(w1_ref.dtype)        # (input_dim, batch_tile)

    # fc1 -> relu -> norm1 (gamma/beta folded into w2/b2)
    h = jnp.dot(w1_ref[...], yT, preferred_element_type=jnp.float32) + b1
    h = jnp.maximum(h, 0.0)
    h = _normalize_cols(h)
    # dropout: identity in eval mode.

    # fc2 (with folded LN1 affine) -> relu -> norm2 (affine folded into w3/b3)
    h = jnp.dot(w2_ref[...], h.astype(w2_ref.dtype),
                preferred_element_type=jnp.float32) + b2
    h = jnp.maximum(h, 0.0)
    h = _normalize_cols(h)
    # dropout: identity in eval mode.

    # fc3 (with folded LN2 affine)
    out = jnp.dot(w3_ref[...], h.astype(w3_ref.dtype),
                  preferred_element_type=jnp.float32) + b3
    out_ref[...] = out.astype(out_ref.dtype)


# ----------------------------------------------------------------------------
# Parameter prep (one-time, outside the per-call path)
# ----------------------------------------------------------------------------
def prepare_params(params, compute_dtype=jnp.bfloat16):
    """Fold LayerNorm affines into the following Linear layers and cast the
    weight matrices to the MXU compute dtype once (bf16 default on every
    generation, including v5e).  Biases stay f32 columns (features, 1)."""
    g1 = params["g1"][:, 0]          # (H,)
    g2 = params["g2"][:, 0]          # (H,)
    be1 = params["be1"]              # (H, 1)
    be2 = params["be2"]              # (H, 1)

    w2_f = params["w2"] * g1[None, :]                    # scale columns
    b2_f = params["b2"] + params["w2"] @ be1             # (H, 1)
    w3_f = params["w3"] * g2[None, :]
    b3_f = params["b3"] + params["w3"] @ be2             # (D, 1)

    return {
        "w1": params["w1"].astype(compute_dtype),        # (H, D)
        "b1": params["b1"].astype(jnp.float32),          # (H, 1)
        "w2": w2_f.astype(compute_dtype),                # (H, H)
        "b2": b2_f.astype(jnp.float32),                  # (H, 1)
        "w3": w3_f.astype(compute_dtype),                # (D, H)
        "b3": b3_f.astype(jnp.float32),                  # (D, 1)
    }


# ----------------------------------------------------------------------------
# Grid sizing (generation-aware)
# ----------------------------------------------------------------------------
def _num_tensorcores():
    try:
        d = jax.devices()[0]
        for attr in ("num_cores", "core_count"):
            n = getattr(d, attr, None)
            if isinstance(n, int) and n > 0:
                return n
    except Exception:
        pass
    return 1


def _auto_batch_tile(B, num_cores):
    """Single-TC (v5e/v6e): one grid step (per-step overhead dominates at this
    size).  Multi-TC (v7x): >=2 steps per core so the yT/out DMAs overlap with
    compute on each core.  Prefer tiles that are multiples of 256 lanes."""
    min_steps = 1 if num_cores <= 1 else 2 * num_cores
    for mult in (256, 128):
        if B % mult == 0:
            tile = (B // min_steps) // mult * mult
            while tile >= mult:
                if B % tile == 0 and B // tile >= min_steps:
                    return tile
                tile -= mult
    return B  # fallback: single step over the whole (small / odd-sized) batch


# ----------------------------------------------------------------------------
# Forward passes
# ----------------------------------------------------------------------------
def odefunc_forward_T(yT, prep, *, batch_tile=None):
    """Transposed-state forward: yT is (input_dim, B) f32 (batch on the lane
    axis).  Returns (input_dim, B) in yT.dtype.  This is the call an ODE
    solver should use in its inner loop so no per-call transposes are paid."""
    input_dim, B = yT.shape
    hidden_dim = prep["w1"].shape[0]

    if batch_tile is None:
        batch_tile = _auto_batch_tile(B, _num_tensorcores())
    batch_tile = min(batch_tile, B)
    assert B % batch_tile == 0, "batch must be divisible by batch_tile"

    def rep_spec(shape):
        # whole-array block, same block for every grid step
        return pl.BlockSpec(shape, lambda i: tuple(0 for _ in shape))

    inputs = (yT, prep["w1"], prep["b1"], prep["w2"], prep["b2"],
              prep["w3"], prep["b3"])

    bytes_accessed = sum(a.size * a.dtype.itemsize for a in inputs)
    bytes_accessed += yT.size * yT.dtype.itemsize          # output
    flops = 2 * B * (input_dim * hidden_dim
                     + hidden_dim * hidden_dim
                     + hidden_dim * input_dim)

    grid = (B // batch_tile,)
    return pl.pallas_call(
        odefunc_kernel,
        out_shape=jax.ShapeDtypeStruct((input_dim, B), yT.dtype),
        grid_spec=pltpu.PrefetchScalarGridSpec(
            num_scalar_prefetch=0,
            grid=grid,
            in_specs=[
                pl.BlockSpec((input_dim, batch_tile), lambda i: (0, i)),  # yT
                rep_spec(prep["w1"].shape), rep_spec(prep["b1"].shape),
                rep_spec(prep["w2"].shape), rep_spec(prep["b2"].shape),
                rep_spec(prep["w3"].shape), rep_spec(prep["b3"].shape),
            ],
            out_specs=pl.BlockSpec((input_dim, batch_tile), lambda i: (0, i)),
        ),
        compiler_params=pltpu.CompilerParams(
            dimension_semantics=("parallel",)),
        cost_estimate=pl.CostEstimate(
            flops=flops,
            transcendentals=2 * B,           # two rsqrts per batch column
            bytes_accessed=bytes_accessed),
    )(*inputs)


def odefunc_forward(y, prep, *, batch_tile=None):
    """Convenience wrapper for a single call with PyTorch-layout (B, D) input.
    For repeated solver calls, transpose once and use odefunc_forward_T."""
    yT = jnp.transpose(y)
    outT = odefunc_forward_T(yT, prep, batch_tile=batch_tile)
    return jnp.transpose(outT)


# ----------------------------------------------------------------------------
# Synthetic parameters + pure-JAX reference
# ----------------------------------------------------------------------------
def init_params(key, input_dim, hidden_dim):
    """Deterministic synthetic init.  Weights in PyTorch layout
    (out_features, in_features); biases / LN params as (features, 1) columns.
    LN gamma/beta are made non-trivial so the affine-folding path is actually
    exercised against the reference."""
    ks = jax.random.split(key, 10)
    s1 = 1.0 / jnp.sqrt(input_dim)
    s2 = 1.0 / jnp.sqrt(hidden_dim)
    return {
        "w1": jax.random.uniform(ks[0], (hidden_dim, input_dim), jnp.float32, -s1, s1),
        "b1": jax.random.uniform(ks[1], (hidden_dim, 1), jnp.float32, -s1, s1),
        "g1": 1.0 + 0.1 * jax.random.normal(ks[2], (hidden_dim, 1), jnp.float32),
        "be1": 0.1 * jax.random.normal(ks[3], (hidden_dim, 1), jnp.float32),
        "w2": jax.random.uniform(ks[4], (hidden_dim, hidden_dim), jnp.float32, -s2, s2),
        "b2": jax.random.uniform(ks[5], (hidden_dim, 1), jnp.float32, -s2, s2),
        "g2": 1.0 + 0.1 * jax.random.normal(ks[6], (hidden_dim, 1), jnp.float32),
        "be2": 0.1 * jax.random.normal(ks[7], (hidden_dim, 1), jnp.float32),
        "w3": jax.random.uniform(ks[8], (input_dim, hidden_dim), jnp.float32, -s2, s2),
        "b3": jax.random.uniform(ks[9], (input_dim, 1), jnp.float32, -s2, s2),
    }


def _ln_ref(h, gamma, beta):
    mu = jnp.mean(h, axis=-1, keepdims=True)
    var = jnp.mean((h - mu) ** 2, axis=-1, keepdims=True)
    return (h - mu) * jax.lax.rsqrt(var + LN_EPS) * gamma + beta


def odefunc_ref(y, params):
    """Pure-JAX reference mirroring the PyTorch module in eval mode
    (standard (batch, features) layout, f32)."""
    h = jnp.maximum(y @ params["w1"].T + params["b1"][:, 0], 0.0)
    h = _ln_ref(h, params["g1"][:, 0], params["be1"][:, 0])
    h = jnp.maximum(h @ params["w2"].T + params["b2"][:, 0], 0.0)
    h = _ln_ref(h, params["g2"][:, 0], params["be2"][:, 0])
    return h @ params["w3"].T + params["b3"][:, 0]


# ----------------------------------------------------------------------------
# Self-test
# ----------------------------------------------------------------------------
if __name__ == "__main__":
    key = jax.random.PRNGKey(0)
    kp, kx = jax.random.split(key)

    batch, input_dim, hidden_dim = 512, 16, 32
    params = init_params(kp, input_dim, hidden_dim)
    y = jax.random.normal(kx, (batch, input_dim), jnp.float32)

    ref = odefunc_ref(y, params)

    # Exact-semantics path (f32 MXU inputs) — semantic reference.
    prep_f32 = prepare_params(params, compute_dtype=jnp.float32)
    out_f32 = jax.block_until_ready(odefunc_forward(y, prep_f32))
    assert out_f32.shape == (batch, input_dim)
    assert jnp.allclose(out_f32, ref, atol=1e-4, rtol=1e-4), "f32 mismatch vs reference"

    # Default bf16 matmul-input path (all generations, incl. v5e);
    # accumulation, biases and LayerNorm remain f32.
    prep_bf16 = prepare_params(params)
    out_bf16 = jax.block_until_ready(odefunc_forward(y, prep_bf16))
    assert out_bf16.shape == (batch, input_dim)
    assert jnp.allclose(out_bf16, ref, atol=2e-1, rtol=1e-1), "bf16 mismatch vs reference"

    # Solver-style usage: keep the state transposed across the whole (Euler)
    # solve — transposes are paid exactly once each way, not per call.
    nsteps, dt = 3, 0.05

    def euler_ref(y0):
        yy = y0
        for _ in range(nsteps):
            yy = yy + dt * odefunc_ref(yy, params)
        return yy

    yT = jnp.transpose(y)
    for _ in range(nsteps):
        yT = yT + dt * odefunc_forward_T(yT, prep_f32)
    out_solve = jax.block_until_ready(jnp.transpose(yT))
    assert jnp.allclose(out_solve, euler_ref(y), atol=1e-3, rtol=1e-3), \
        "transposed-state Euler solve mismatch vs reference"

    print("KERNEL_OK")
</pallas_src>

<mosaic_0001>
module attributes {stable_mosaic.version = 11 : i64} {
  func.func @odefunc_kernel(%arg0: i32, %arg1: memref<16x512xf32, #tpu.memory_space<vmem>>, %arg2: memref<32x16xf32, #tpu.memory_space<vmem>>, %arg3: memref<32x1xf32, #tpu.memory_space<vmem>>, %arg4: memref<32x32xf32, #tpu.memory_space<vmem>>, %arg5: memref<32x1xf32, #tpu.memory_space<vmem>>, %arg6: memref<16x32xf32, #tpu.memory_space<vmem>>, %arg7: memref<16x1xf32, #tpu.memory_space<vmem>>, %arg8: memref<16x512xf32, #tpu.memory_space<vmem>>) attributes {dimension_semantics = [#tpu.dimension_semantics<parallel>], iteration_bounds = array<i64: 1>, scalar_prefetch = 0 : i64, scratch_operands = 0 : i64, tpu.core_type = #tpu.core_type<tc>, window_params = [{transform_indices = @transform_0, window_bounds = array<i64: 16, 512>}, {pipeline_mode = #tpu.pipeline_mode<synchronous>, transform_indices = @transform_1, window_bounds = array<i64: 32, 16>}, {pipeline_mode = #tpu.pipeline_mode<synchronous>, transform_indices = @transform_2, window_bounds = array<i64: 32, 1>}, {pipeline_mode = #tpu.pipeline_mode<synchronous>, transform_indices = @transform_3, window_bounds = array<i64: 32, 32>}, {pipeline_mode = #tpu.pipeline_mode<synchronous>, transform_indices = @transform_4, window_bounds = array<i64: 32, 1>}, {pipeline_mode = #tpu.pipeline_mode<synchronous>, transform_indices = @transform_5, window_bounds = array<i64: 16, 32>}, {pipeline_mode = #tpu.pipeline_mode<synchronous>, transform_indices = @transform_6, window_bounds = array<i64: 16, 1>}, {transform_indices = @transform_7, window_bounds = array<i64: 16, 512>}]} {
    %c0 = arith.constant 0 : index
    %c0_0 = arith.constant 0 : index
    %0 = vector.load %arg3[%c0, %c0_0] : memref<32x1xf32, #tpu.memory_space<vmem>>, vector<32x1xf32>
    %c0_1 = arith.constant 0 : index
    %c0_2 = arith.constant 0 : index
    %1 = vector.load %arg5[%c0_1, %c0_2] : memref<32x1xf32, #tpu.memory_space<vmem>>, vector<32x1xf32>
    %c0_3 = arith.constant 0 : index
    %c0_4 = arith.constant 0 : index
    %2 = vector.load %arg7[%c0_3, %c0_4] : memref<16x1xf32, #tpu.memory_space<vmem>>, vector<16x1xf32>
    %c0_5 = arith.constant 0 : index
    %c0_6 = arith.constant 0 : index
    %3 = vector.load %arg1[%c0_5, %c0_6] : memref<16x512xf32, #tpu.memory_space<vmem>>, vector<16x512xf32>
    %c0_7 = arith.constant 0 : index
    %c0_8 = arith.constant 0 : index
    %4 = vector.load %arg2[%c0_7, %c0_8] : memref<32x16xf32, #tpu.memory_space<vmem>>, vector<32x16xf32>
    %cst = arith.constant dense<0.000000e+00> : vector<32x512xf32>
    %5 = tpu.matmul %4, %3, %cst {dimension_numbers = #tpu.dot_dimension_numbers<[1], [0], [0], [1], [0, 0, 1, 1], [], []>} : vector<32x16xf32>, vector<16x512xf32>, vector<32x512xf32> -> vector<32x512xf32>
    %6 = vector.broadcast %0 : vector<32x1xf32> to vector<32x512xf32>
    %7 = arith.addf %5, %6 : vector<32x512xf32>
    %cst_9 = arith.constant 0.000000e+00 : f32
    %8 = vector.broadcast %cst_9 : f32 to vector<32x512xf32>
    %9 = arith.maximumf %7, %8 : vector<32x512xf32>
    %cst_10 = arith.constant dense<0.000000e+00> : vector<512xf32>
    %10 = vector.multi_reduction <add>, %9, %cst_10 [0] : vector<32x512xf32> to vector<512xf32>
    %11 = vector.shape_cast %10 : vector<512xf32> to vector<1x512xf32>
    %cst_11 = arith.constant 3.200000e+01 : f32
    %12 = vector.broadcast %cst_11 : f32 to vector<1x512xf32>
    %13 = arith.divf %11, %12 : vector<1x512xf32>
    %14 = arith.mulf %9, %9 : vector<32x512xf32>
    %cst_12 = arith.constant dense<0.000000e+00> : vector<512xf32>
    %15 = vector.multi_reduction <add>, %14, %cst_12 [0] : vector<32x512xf32> to vector<512xf32>
    %16 = vector.shape_cast %15 : vector<512xf32> to vector<1x512xf32>
    %cst_13 = arith.constant 3.200000e+01 : f32
    %17 = vector.broadcast %cst_13 : f32 to vector<1x512xf32>
    %18 = arith.divf %16, %17 : vector<1x512xf32>
    %19 = arith.mulf %13, %13 : vector<1x512xf32>
    %20 = arith.subf %18, %19 : vector<1x512xf32>
    %cst_14 = arith.constant 0.000000e+00 : f32
    %21 = vector.broadcast %cst_14 : f32 to vector<1x512xf32>
    %22 = arith.maximumf %20, %21 : vector<1x512xf32>
    %23 = vector.broadcast %13 : vector<1x512xf32> to vector<32x512xf32>
    %24 = arith.subf %9, %23 : vector<32x512xf32>
    %cst_15 = arith.constant 9.99999974E-6 : f32
    %25 = vector.broadcast %cst_15 : f32 to vector<1x512xf32>
    %26 = arith.addf %22, %25 : vector<1x512xf32>
    %27 = math.rsqrt %26 : vector<1x512xf32>
    %28 = vector.broadcast %27 : vector<1x512xf32> to vector<32x512xf32>
    %29 = arith.mulf %24, %28 : vector<32x512xf32>
    %c0_16 = arith.constant 0 : index
    %c0_17 = arith.constant 0 : index
    %30 = vector.load %arg4[%c0_16, %c0_17] : memref<32x32xf32, #tpu.memory_space<vmem>>, vector<32x32xf32>
    %cst_18 = arith.constant dense<0.000000e+00> : vector<32x512xf32>
    %31 = tpu.matmul %30, %29, %cst_18 {dimension_numbers = #tpu.dot_dimension_numbers<[1], [0], [0], [1], [0, 0, 1, 1], [], []>} : vector<32x32xf32>, vector<32x512xf32>, vector<32x512xf32> -> vector<32x512xf32>
    %32 = vector.broadcast %1 : vector<32x1xf32> to vector<32x512xf32>
    %33 = arith.addf %31, %32 : vector<32x512xf32>
    %cst_19 = arith.constant 0.000000e+00 : f32
    %34 = vector.broadcast %cst_19 : f32 to vector<32x512xf32>
    %35 = arith.maximumf %33, %34 : vector<32x512xf32>
    %cst_20 = arith.constant dense<0.000000e+00> : vector<512xf32>
    %36 = vector.multi_reduction <add>, %35, %cst_20 [0] : vector<32x512xf32> to vector<512xf32>
    %37 = vector.shape_cast %36 : vector<512xf32> to vector<1x512xf32>
    %cst_21 = arith.constant 3.200000e+01 : f32
    %38 = vector.broadcast %cst_21 : f32 to vector<1x512xf32>
    %39 = arith.divf %37, %38 : vector<1x512xf32>
    %40 = arith.mulf %35, %35 : vector<32x512xf32>
    %cst_22 = arith.constant dense<0.000000e+00> : vector<512xf32>
    %41 = vector.multi_reduction <add>, %40, %cst_22 [0] : vector<32x512xf32> to vector<512xf32>
    %42 = vector.shape_cast %41 : vector<512xf32> to vector<1x512xf32>
    %cst_23 = arith.constant 3.200000e+01 : f32
    %43 = vector.broadcast %cst_23 : f32 to vector<1x512xf32>
    %44 = arith.divf %42, %43 : vector<1x512xf32>
    %45 = arith.mulf %39, %39 : vector<1x512xf32>
    %46 = arith.subf %44, %45 : vector<1x512xf32>
    %cst_24 = arith.constant 0.000000e+00 : f32
    %47 = vector.broadcast %cst_24 : f32 to vector<1x512xf32>
    %48 = arith.maximumf %46, %47 : vector<1x512xf32>
    %49 = vector.broadcast %39 : vector<1x512xf32> to vector<32x512xf32>
    %50 = arith.subf %35, %49 : vector<32x512xf32>
    %cst_25 = arith.constant 9.99999974E-6 : f32
    %51 = vector.broadcast %cst_25 : f32 to vector<1x512xf32>
    %52 = arith.addf %48, %51 : vector<1x512xf32>
    %53 = math.rsqrt %52 : vector<1x512xf32>
    %54 = vector.broadcast %53 : vector<1x512xf32> to vector<32x512xf32>
    %55 = arith.mulf %50, %54 : vector<32x512xf32>
    %c0_26 = arith.constant 0 : index
    %c0_27 = arith.constant 0 : index
    %56 = vector.load %arg6[%c0_26, %c0_27] : memref<16x32xf32, #tpu.memory_space<vmem>>, vector<16x32xf32>
    %cst_28 = arith.constant dense<0.000000e+00> : vector<16x512xf32>
    %57 = tpu.matmul %56, %55, %cst_28 {dimension_numbers = #tpu.dot_dimension_numbers<[1], [0], [0], [1], [0, 0, 1, 1], [], []>} : vector<16x32xf32>, vector<32x512xf32>, vector<16x512xf32> -> vector<16x512xf32>
    %58 = vector.broadcast %2 : vector<16x1xf32> to vector<16x512xf32>
    %59 = arith.addf %57, %58 : vector<16x512xf32>
    %c0_29 = arith.constant 0 : index
    %c0_30 = arith.constant 0 : index
    %60 = vector.load %arg8[%c0_29, %c0_30] : memref<16x512xf32, #tpu.memory_space<vmem>>, vector<16x512xf32>
    tpu.vector_store %arg8[%c0_29, %c0_30], %59 {strides = array<i32>} : memref<16x512xf32, #tpu.memory_space<vmem>>, vector<16x512xf32>,
    return
  }
  func.func @transform_0(%arg0: i32) -> (i32, i32) {
    %c0_i32 = arith.constant 0 : i32
    %c0_i32_0 = arith.constant 0 : i32
    return %c0_i32, %arg0 : i32, i32
  }
  func.func @transform_1(%arg0: i32) -> (i32, i32) {
    %c0_i32 = arith.constant 0 : i32
    %c0_i32_0 = arith.constant 0 : i32
    %c0_i32_1 = arith.constant 0 : i32
    return %c0_i32, %c0_i32_0 : i32, i32
  }
  func.func @transform_2(%arg0: i32) -> (i32, i32) {
    %c0_i32 = arith.constant 0 : i32
    %c0_i32_0 = arith.constant 0 : i32
    %c0_i32_1 = arith.constant 0 : i32
    return %c0_i32, %c0_i32_0 : i32, i32
  }
  func.func @transform_3(%arg0: i32) -> (i32, i32) {
    %c0_i32 = arith.constant 0 : i32
    %c0_i32_0 = arith.constant 0 : i32
    %c0_i32_1 = arith.constant 0 : i32
    return %c0_i32, %c0_i32_0 : i32, i32
  }
  func.func @transform_4(%arg0: i32) -> (i32, i32) {
    %c0_i32 = arith.constant 0 : i32
    %c0_i32_0 = arith.constant 0 : i32
    %c0_i32_1 = arith.constant 0 : i32
    return %c0_i32, %c0_i32_0 : i32, i32
  }
  func.func @transform_5(%arg0: i32) -> (i32, i32) {
    %c0_i32 = arith.constant 0 : i32
    %c0_i32_0 = arith.constant 0 : i32
    %c0_i32_1 = arith.constant 0 : i32
    return %c0_i32, %c0_i32_0 : i32, i32
  }
  func.func @transform_6(%arg0: i32) -> (i32, i32) {
    %c0_i32 = arith.constant 0 : i32
    %c0_i32_0 = arith.constant 0 : i32
    %c0_i32_1 = arith.constant 0 : i32
    return %c0_i32, %c0_i32_0 : i32, i32
  }
  func.func @transform_7(%arg0: i32) -> (i32, i32) {
    %c0_i32 = arith.constant 0 : i32
    %c0_i32_0 = arith.constant 0 : i32
    return %c0_i32, %arg0 : i32, i32
  }
}

</mosaic_0001>

<bundles_post_ra>
// kernel: tpu_custom_call.1
= control target key start
LH: loop header
LB: loop body
LE: loop exit
PB: predicated region body
PF: predicated region fallthrough
CT: control target
= control target key end

     0   :  { %v1107_v7 = vmov 0.0   ;;  %v1108_v12 = vmov 0   ;;  %vm69_vm0 = vcmask 130048   ;;  %s1496_s0 = inlined_call_operand.vmem [shape: f32[16,512], index: 0, kind: input, shape index: {}]   ;;  %s1497_s1 = inlined_call_operand.vmem [shape: f32[32,16], index: 1, kind: input, shape index: {}]   ;;  %s1498_s2 = inlined_call_operand.vmem [shape: f32[32,1], index: 2, kind: input, shape index: {}]   ;;  %s1499_s3 = inlined_call_operand.vmem [shape: f32[32,32], index: 3, kind: input, shape index: {}]   ;;  %s1500_s4 = inlined_call_operand.vmem [shape: f32[32,1], index: 4, kind: input, shape index: {}]   ;;  %s1501_s5 = inlined_call_operand.vmem [shape: f32[16,32], index: 5, kind: input, shape index: {}]   ;;  %s1502_s6 = inlined_call_operand.vmem [shape: f32[16,1], index: 6, kind: input, shape index: {}]   ;;  %s1503_s7 = inlined_call_operand.hbm [shape: f32[16,512], index: 7, kind: output, shape index: {}]  }
   0x1   :  { %v38_v0 = vld [vmem:[%s1496_s0 + $0x8] sm:$0xff]  ;;  %v40_v2 = vld [vmem:[%s1496_s0 + $0x18] sm:$0xff]  ;;  %v37_v5 = vld [vmem:[%s1496_s0] sm:$0xff]  ;;  %146 = vmatprep.mubr.f32.mxu0 %v1107_v7  ;;  %235 = vmatprep.mubr.f32.mxu1 %v1107_v7 }
   0x2   :  { %v42_v1 = vld [vmem:[%s1496_s0 + $0x28] sm:$0xff]  ;;  %v44_v4 = vld [vmem:[%s1496_s0 + $0x38] sm:$0xff]  ;;  %v41_v6 = vld [vmem:[%s1496_s0 + $0x20] sm:$0xff]  ;;  %1065 = vset.pattern.permute.xlu0 %v1108_v12  ;;  %1066 = vset.pattern.permute.xlu1 %v1108_v12 }
   0x3   :  { %v1020_v3 = vpack.c.bf16 %v42_v1, %v38_v0  ;;  %v1024_v8 = vpack.c.bf16 %v44_v4, %v40_v2  ;;  %v1022_v9 = vpack.c.bf16 %v41_v6, %v37_v5  ;;  %v39_v10 = vld [vmem:[%s1496_s0 + $0x10] sm:$0xff]  ;;  %v45_v14 = vld [vmem:[%s1497_s1] sm:$0xff]  ;;  %v28_v17 = vld [vmem:[%s1498_s2 + $0x8] sm:$0xff] }
   0x4   :  { %v43_v11 = vld [vmem:[%s1496_s0 + $0x30] sm:$0xff]  ;;  %v27_v15 = vld [vmem:[%s1498_s2] sm:$0xff]  ;;  %v30_v18 = vld [vmem:[%s1498_s2 + $0x18] sm:$0xff] }
   0x5   :  { %1021 = vmatprep.subr.bf16.mxu0 %v1020_v3  ;;  %v1026_v13 = vpack.c.bf16 %v43_v11, %v39_v10  ;;  %1025 = vmatprep.subr.bf16.mxu1 %v1024_v8  ;;  %v29_v16 = vld [vmem:[%s1498_s2 + $0x10] sm:$0xff] }
   0x6   :  { %1023 = vmatpush1.bf16.msra.mxu0 %v1022_v9  ;;  %51 = vperm.xlu0 %1065, %v27_v15  }
   0x7   :  { %1027 = vmatpush1.bf16.msra.mxu1 %v1026_v13  ;;  %61 = vperm.xlu1 %1066, %v29_v16  }
   0x9   :  { %1000 = vmatmul.mubr.msk.f32.vlgmr.msra.gmra.mrb[0].mxu0 %vm69_vm0, %v45_v14 }
   0xa   :  { %12 = vsyncpa [#allocation3], 0  ;;  %1004 = vmatmul.mubr.msk.f32.vlgmr.msra.gmra.mrb[0].mxu1 %vm69_vm0, %v45_v14  ;;  %152 = vmatprep.mubr.f32.mxu0 %v1107_v7  ;;  %v46_v19 = vld [vmem:[%s1497_s1 + $0x8] sm:$0xff]  ;;  %v31_v20 = vld [vmem:[%s1500_s4] sm:$0xff]  ;;  %vm449_vm1 = vcmask 261120  }
   0xb   :  { %241 = vmatprep.mubr.f32.mxu1 %v1107_v7  ;;  %56 = vperm.xlu0 %1065, %v28_v17   ;;  %v32_v21 = vld [vmem:[%s1500_s4 + $0x8] sm:$0xff]  ;;  %v47_v22 = vld [vmem:[%s1497_s1 + $0x10] sm:$0xff]  ;;  %v34_v24 = vld [vmem:[%s1500_s4 + $0x18] sm:$0xff] }
   0xc   :  { %66 = vperm.xlu1 %1066, %v30_v18   ;;  %v33_v23 = vld [vmem:[%s1500_s4 + $0x10] sm:$0xff]  ;;  %v48_v25 = vld [vmem:[%s1497_s1 + $0x18] sm:$0xff]  ;;  %v35_v26 = vld [vmem:[%s1502_s6] sm:$0xff] }
   0xd   :  { %1001 = vmatmul.mubr.msk.f32.gmra.mrb[2].mxu0 %vm69_vm0, %v46_v19  ;;  %v36_v27 = vld [vmem:[%s1502_s6 + $0x8] sm:$0xff] }
   0xe   :  { %1005 = vmatmul.mubr.msk.f32.gmra.mrb[2].mxu1 %vm69_vm0, %v46_v19  ;;  %158 = vmatprep.mubr.f32.mxu0 %v1107_v7 }
   0xf   :  { %247 = vmatprep.mubr.f32.mxu1 %v1107_v7  ;;  %431 = vperm.xlu0 %1065, %v31_v20  }
  0x10   :  { %436 = vperm.xlu1 %1066, %v32_v21  }
  0x11   :  { %1002 = vmatmul.mubr.msk.f32.gmra.mrb[4].mxu0 %vm69_vm0, %v47_v22 }
  0x12   :  { %1006 = vmatmul.mubr.msk.f32.gmra.mrb[4].mxu1 %vm69_vm0, %v47_v22  ;;  %164 = vmatprep.mubr.f32.mxu0 %v1107_v7 }
  0x13   :  { %253 = vmatprep.mubr.f32.mxu1 %v1107_v7  ;;  %441 = vperm.xlu0 %1065, %v33_v23  }
  0x14   :  { %446 = vperm.xlu1 %1066, %v34_v24  }
  0x15   :  { %1003 = vmatmul.mubr.msk.f32.gmra.mrb[6].mxu0 %vm69_vm0, %v48_v25 }
  0x16   :  { %1007 = vmatmul.mubr.msk.f32.gmra.mrb[6].mxu1 %vm69_vm0, %v48_v25  ;;  %526 = vmatprep.mubr.f32.mxu0 %v1107_v7 }
  0x17   :  { %808 = vperm.xlu0 %1065, %v35_v26   ;;  %615 = vmatprep.mubr.f32.mxu1 %v1107_v7 }
  0x18   :  { %813 = vperm.xlu1 %1066, %v36_v27  }
  0x85   :  { %v52_v28 = vpop.permute.xlu0 %51 }
  0x86   :  { %v62_v46 = vpop.permute.xlu1 %61 }
  0x8a   :  { %v57_v38 = vpop.permute.xlu0 %56 }
  0x8b   :  { %v67_v11 = vpop.permute.xlu1 %66 }
  0xdc   :  { %v148_v29 = vpop.f32.mrb[0].mxu0 }
  0xdd   :  { %v149_v30 = vadd.f32 %v148_v29, %v52_v28  ;;  %v237_v31 = vpop.f32.mrb[0].mxu1  ;;  %v150_v32 = vpop.f32.mrb[1].mxu0 }
  0xde   :  { %v238_v33 = vadd.f32 %v237_v31, %v52_v28  ;;  %v151_v34 = vadd.f32 %v150_v32, %v52_v28  ;;  %v239_v35 = vpop.f32.mrb[1].mxu1 }
  0xdf   :  { %v1236_v36 = vmax.f32 %v149_v30, 0.0  ;;  %v240_v37 = vadd.f32 %v239_v35, %v52_v28 }
  0xe0   :  { %v1238_v39 = vmax.f32 %v238_v33, 0.0  ;;  %v1240_v40 = vmax.f32 %v151_v34, 0.0  ;;  %v154_v41 = vpop.f32.mrb[2].mxu0 }
  0xe1   :  { %v1242_v42 = vmax.f32 %v240_v37, 0.0  ;;  %v155_v43 = vadd.f32 %v154_v41, %v57_v38  ;;  %v243_v44 = vpop.f32.mrb[2].mxu1  ;;  %v156_v45 = vpop.f32.mrb[3].mxu0  ;;  %v317_v50 = vmul.f32 %v1236_v36, %v1236_v36 }
  0xe2   :  { %v244_v47 = vadd.f32 %v243_v44, %v57_v38  ;;  %v157_v48 = vadd.f32 %v156_v45, %v57_v38  ;;  %v245_v49 = vpop.f32.mrb[3].mxu1  ;;  %v319_v51 = vmul.f32 %v1238_v39, %v1238_v39  ;;  %v318_v54 = vmul.f32 %v1240_v40, %v1240_v40 }
  0xe3   :  { %v1248_v52 = vmax.f32 %v155_v43, 0.0  ;;  %v246_v53 = vadd.f32 %v245_v49, %v57_v38  ;;  %v320_v55 = vmul.f32 %v1242_v42, %v1242_v42 }
  0xe4   :  { %v1254_v56 = vmax.f32 %v244_v47, 0.0  ;;  %v1256_v57 = vmax.f32 %v157_v48, 0.0  ;;  %v160_v58 = vpop.f32.mrb[4].mxu0 }
  0xe5   :  { %v276_v59 = vadd.f32 %v1248_v52, %v1236_v36  ;;  %v321_v60 = vmul.f32 %v1248_v52, %v1248_v52  ;;  %v1262_v61 = vmax.f32 %v246_v53, 0.0  ;;  %v161_v62 = vadd.f32 %v160_v58, %v62_v46  ;;  %v249_v63 = vpop.f32.mrb[4].mxu1  ;;  %v162_v0 = vpop.f32.mrb[5].mxu0 }
  0xe6   :  { %v294_v1 = vadd.f32 %v1254_v56, %v1238_v39  ;;  %v323_v2 = vmul.f32 %v1254_v56, %v1254_v56  ;;  %v285_v3 = vadd.f32 %v1256_v57, %v1240_v40  ;;  %v322_v4 = vmul.f32 %v1256_v57, %v1256_v57  ;;  %v251_v5 = vpop.f32.mrb[5].mxu1 }
  0xe7   :  { %v333_v6 = vadd.f32 %v321_v60, %v317_v50  ;;  %v303_v8 = vadd.f32 %v1262_v61, %v1242_v42  ;;  %v324_v9 = vmul.f32 %v1262_v61, %v1262_v61  ;;  %v1276_v10 = vmax.f32 %v161_v62, 0.0 }
  0xe8   :  { %v351_v12 = vadd.f32 %v323_v2, %v319_v51  ;;  %v342_v13 = vadd.f32 %v322_v4, %v318_v54  ;;  %v250_v14 = vadd.f32 %v249_v63, %v62_v46  ;;  %v163_v15 = vadd.f32 %v162_v0, %v62_v46  ;;  %v166_v16 = vpop.f32.mrb[6].mxu0 }
  0xe9   :  { %v360_v17 = vadd.f32 %v324_v9, %v320_v55  ;;  %v277_v18 = vadd.f32 %v276_v59, %v1276_v10  ;;  %v325_v19 = vmul.f32 %v1276_v10, %v1276_v10  ;;  %v252_v20 = vadd.f32 %v251_v5, %v62_v46  ;;  %v255_v21 = vpop.f32.mrb[6].mxu1  ;;  %v168_v22 = vpop.f32.mrb[7].mxu0 }
  0xea   :  { %v1281_v23 = vmax.f32 %v250_v14, 0.0  ;;  %v1283_v24 = vmax.f32 %v163_v15, 0.0  ;;  %v167_v25 = vadd.f32 %v166_v16, %v67_v11  ;;  %v256_v26 = vadd.f32 %v255_v21, %v67_v11  ;;  %v257_v27 = vpop.f32.mrb[7].mxu1 }
  0xeb   :  { %v334_v28 = vadd.f32 %v333_v6, %v325_v19  ;;  %v1285_v29 = vmax.f32 %v252_v20, 0.0  ;;  %v169_v30 = vadd.f32 %v168_v22, %v67_v11  ;;  %v258_v31 = vadd.f32 %v257_v27, %v67_v11 }
  0xec   :  { %v295_v32 = vadd.f32 %v294_v1, %v1281_v23  ;;  %v327_v33 = vmul.f32 %v1281_v23, %v1281_v23  ;;  %v286_v34 = vadd.f32 %v285_v3, %v1283_v24  ;;  %v326_v35 = vmul.f32 %v1283_v24, %v1283_v24 }
  0xed   :  { %v304_v37 = vadd.f32 %v303_v8, %v1285_v29  ;;  %v328_v38 = vmul.f32 %v1285_v29, %v1285_v29  ;;  %v1296_v41 = vmax.f32 %v167_v25, 0.0  ;;  %v1298_v43 = vmax.f32 %v256_v26, 0.0 }
  0xee   :  { %v352_v44 = vadd.f32 %v351_v12, %v327_v33  ;;  %v343_v45 = vadd.f32 %v342_v13, %v326_v35  ;;  %v1300_v46 = vmax.f32 %v169_v30, 0.0  ;;  %v1302_v47 = vmax.f32 %v258_v31, 0.0 }
  0xef   :  { %v361_v48 = vadd.f32 %v360_v17, %v328_v38  ;;  %v278_v49 = vadd.f32 %v277_v18, %v1296_v41  ;;  %v329_v50 = vmul.f32 %v1296_v41, %v1296_v41  ;;  %v296_v51 = vadd.f32 %v295_v32, %v1298_v43 }
  0xf0   :  { %v331_v53 = vmul.f32 %v1298_v43, %v1298_v43  ;;  %v287_v54 = vadd.f32 %v286_v34, %v1300_v46  ;;  %v330_v55 = vmul.f32 %v1300_v46, %v1300_v46  ;;  %v305_v58 = vadd.f32 %v304_v37, %v1302_v47 }
  0xf1   :  { %v279_v59 = vrot.slane %v278_v49, 4  ;;  %v335_v60 = vadd.f32 %v334_v28, %v329_v50  ;;  %v297_v62 = vrot.slane %v296_v51, 4  ;;  %v332_v63 = vmul.f32 %v1302_v47, %v1302_v47 }
  0xf2   :  { %v353_v0 = vadd.f32 %v352_v44, %v331_v53  ;;  %v288_v1 = vrot.slane %v287_v54, 4  ;;  %v344_v2 = vadd.f32 %v343_v45, %v330_v55  ;;  %v306_v3 = vrot.slane %v305_v58, 4 }
  0xf3   :  { %v280_v4 = vadd.f32 %v279_v59, %v278_v49  ;;  %v336_v5 = vrot.slane %v335_v60, 4  ;;  %v298_v6 = vadd.f32 %v297_v62, %v296_v51  ;;  %v362_v8 = vadd.f32 %v361_v48, %v332_v63 }
  0xf4   :  { %v354_v9 = vrot.slane %v353_v0, 4  ;;  %v289_v11 = vadd.f32 %v288_v1, %v287_v54  ;;  %v345_v12 = vrot.slane %v344_v2, 4  ;;  %v307_v13 = vadd.f32 %v306_v3, %v305_v58 }
  0xf5   :  { %v281_v14 = vrot.slane %v280_v4, 2  ;;  %v337_v15 = vadd.f32 %v336_v5, %v335_v60  ;;  %v299_v16 = vrot.slane %v298_v6, 2  ;;  %v363_v17 = vrot.slane %v362_v8, 4 }
  0xf6   :  { %v355_v18 = vadd.f32 %v354_v9, %v353_v0  ;;  %v290_v19 = vrot.slane %v289_v11, 2  ;;  %v346_v20 = vadd.f32 %v345_v12, %v344_v2  ;;  %v308_v21 = vrot.slane %v307_v13, 2 }
  0xf7   :  { %v282_v22 = vadd.f32 %v281_v14, %v280_v4  ;;  %v338_v25 = vrot.slane %v337_v15, 2  ;;  %v300_v26 = vadd.f32 %v299_v16, %v298_v6  ;;  %v364_v27 = vadd.f32 %v363_v17, %v362_v8 }
  0xf8   :  { %v356_v28 = vrot.slane %v355_v18, 2  ;;  %v291_v30 = vadd.f32 %v290_v19, %v289_v11  ;;  %v347_v31 = vrot.slane %v346_v20, 2  ;;  %v309_v32 = vadd.f32 %v308_v21, %v307_v13 }
  0xf9   :  { %v283_v33 = vrot.slane %v282_v22, 1  ;;  %v339_v34 = vadd.f32 %v338_v25, %v337_v15  ;;  %v301_v35 = vrot.slane %v300_v26, 1  ;;  %v365_v37 = vrot.slane %v364_v27, 2 }
  0xfa   :  { %v357_v38 = vadd.f32 %v356_v28, %v355_v18  ;;  %v292_v44 = vrot.slane %v291_v30, 1  ;;  %v348_v45 = vadd.f32 %v347_v31, %v346_v20  ;;  %v310_v48 = vrot.slane %v309_v32, 1 }
  0xfb   :  { %v284_v49 = vadd.f32 %v283_v33, %v282_v22  ;;  %v340_v50 = vrot.slane %v339_v34, 1  ;;  %v302_v51 = vadd.f32 %v301_v35, %v300_v26  ;;  %v366_v53 = vadd.f32 %v365_v37, %v364_v27 }
  0xfc   :  { %v358_v54 = vrot.slane %v357_v38, 1  ;;  %v293_v55 = vadd.f32 %v292_v44, %v291_v30  ;;  %v349_v58 = vrot.slane %v348_v45, 1  ;;  %v311_v59 = vadd.f32 %v310_v48, %v309_v32 }
  0xfd   :  { %v313_v60 = vmul.f32 0.03125, %v284_v49  ;;  %v341_v62 = vadd.f32 %v340_v50, %v339_v34  ;;  %v315_v63 = vmul.f32 0.03125, %v302_v51  ;;  %v367_v0 = vrot.slane %v366_v53, 1 }
  0xfe   :  { %v359_v1 = vadd.f32 %v358_v54, %v357_v38  ;;  %v314_v2 = vmul.f32 0.03125, %v293_v55  ;;  %v350_v3 = vadd.f32 %v349_v58, %v348_v45  ;;  %v1316_v4 = vmul.f32 0.03125, %v311_v59 }
  0xff   :  { %v369_v5 = vmul.f32 0.03125, %v341_v62  ;;  %v373_v6 = vmul.f32 %v313_v60, %v313_v60  ;;  %v397_v8 = vsub.f32 %v1296_v41, %v313_v60  ;;  %v375_v9 = vmul.f32 %v315_v63, %v315_v63 }
 0x100   :  { %v371_v11 = vmul.f32 0.03125, %v359_v1  ;;  %v399_v12 = vsub.f32 %v1298_v43, %v315_v63  ;;  %v370_v13 = vmul.f32 0.03125, %v350_v3  ;;  %v374_v14 = vmul.f32 %v314_v2, %v314_v2 }
 0x101   :  { %v377_v15 = vsub.f32 %v369_v5, %v373_v6  ;;  %v398_v16 = vsub.f32 %v1300_v46, %v314_v2  ;;  %v368_v17 = vadd.f32 %v367_v0, %v366_v53  ;;  %v376_v18 = vmul.f32 %v1316_v4, %v1316_v4 }
 0x102   :  { %v379_v19 = vsub.f32 %v371_v11, %v375_v9  ;;  %v378_v20 = vsub.f32 %v370_v13, %v374_v14  ;;  %v400_v21 = vsub.f32 %v1302_v47, %v1316_v4  ;;  %v386_v41 = vsub.f32 %v1240_v40, %v314_v2  ;;  %v426_v9 = vld [vmem:[%s1499_s3 + $0x8] sm:$0xff]  ;;  %v427_v11 = vld [vmem:[%s1499_s3 + $0x10] sm:$0xff]  ;;  %v432_v13 = vpop.permute.xlu0 %431 }
 0x103   :  { %v381_v22 = vmax.f32 %v377_v15, 0.0  ;;  %v372_v25 = vmul.f32 0.03125, %v368_v17  ;;  %v390_v43 = vsub.f32 %v1256_v57, %v314_v2  ;;  %v388_v26 = vsub.f32 %v1242_v42, %v1316_v4 }
 0x104   :  { %v383_v27 = vmax.f32 %v379_v19, 0.0  ;;  %v382_v46 = vmax.f32 %v378_v20, 0.0  ;;  %v392_v28 = vsub.f32 %v1262_v61, %v1316_v4  ;;  %v385_v30 = vsub.f32 %v1236_v36, %v313_v60 }
 0x105   :  { %v401_v31 = vadd.f32 1e-05, %v381_v22  ;;  %v380_v32 = vsub.f32 %v372_v25, %v376_v18  ;;  %v389_v47 = vsub.f32 %v1248_v52, %v313_v60  ;;  %v387_v40 = vsub.f32 %v1238_v39, %v315_v63 }
 0x106   :  { %v403_v33 = vadd.f32 1e-05, %v383_v27  ;;  %v402_v34 = vadd.f32 1e-05, %v382_v46  ;;  %v391_v57 = vsub.f32 %v1254_v56, %v315_v63  ;;  %v394_v35 = vsub.f32 %v1283_v24, %v314_v2 }
 0x107   :  { %1067 = vrsqrt.f32 %v401_v31  ;;  %v384_v42 = vmax.f32 %v380_v32, 0.0  ;;  %v396_v37 = vsub.f32 %v1285_v29, %v1316_v4  ;;  %v393_v61 = vsub.f32 %v1276_v10, %v313_v60 }
 0x108   :  { %1069 = vrsqrt.f32 %v403_v33  ;;  %v395_v36 = vsub.f32 %v1281_v23, %v315_v63 }
 0x109   :  { %1071 = vrsqrt.f32 %v402_v34  ;;  %v404_v52 = vadd.f32 1e-05, %v384_v42 }
 0x10b   :  { %1073 = vrsqrt.f32 %v404_v52 }
 0x111   :  { %v1068_v39 = vpop.eup %1067 }
 0x112   :  { %v1070_v38 = vpop.eup %1069  ;;  %v421_v44 = vmul.f32 %v1068_v39, %v397_v8  ;;  %v409_v45 = vmul.f32 %v1068_v39, %v385_v30  ;;  %v413_v56 = vmul.f32 %v1068_v39, %v389_v47  ;;  %v417_v48 = vmul.f32 %v1068_v39, %v393_v61  ;;  %v425_v8 = vld [vmem:[%s1499_s3] sm:$0xff] }
 0x113   :  { %v1072_v24 = vpop.eup %1071  ;;  %v423_v49 = vmul.f32 %v1070_v38, %v399_v12  ;;  %v411_v50 = vmul.f32 %v1070_v38, %v387_v40  ;;  %v415_v51 = vmul.f32 %v1070_v38, %v391_v57  ;;  %v419_v53 = vmul.f32 %v1070_v38, %v395_v36  ;;  %v428_v12 = vld [vmem:[%s1499_s3 + $0x18] sm:$0xff]  ;;  %v442_v57 = vpop.permute.xlu0 %441 }
 0x114   :  { %v410_v29 = vmul.f32 %v1072_v24, %v386_v41  ;;  %v414_v54 = vmul.f32 %v1072_v24, %v390_v43  ;;  %v1030_v10 = vpack.c.bf16 %v413_v56, %v409_v45  ;;  %v418_v55 = vmul.f32 %v1072_v24, %v394_v35  ;;  %v437_v41 = vpop.permute.xlu1 %436 }
 0x115   :  { %v1074_v58 = vpop.eup %1073  ;;  %v1038_v23 = vpack.c.bf16 %v415_v51, %v411_v50  ;;  %v422_v59 = vmul.f32 %v1072_v24, %v398_v16  ;;  %v1034_v60 = vpack.c.bf16 %v421_v44, %v417_v48  ;;  %v1042_v62 = vpack.c.bf16 %v423_v49, %v419_v53 }
 0x116   :  { %v1028_v63 = vpack.c.bf16 %v414_v54, %v410_v29  ;;  %v412_v0 = vmul.f32 %v1074_v58, %v388_v26  ;;  %v416_v1 = vmul.f32 %v1074_v58, %v392_v28  ;;  %v420_v2 = vmul.f32 %v1074_v58, %v396_v37 }
 0x117   :  { %v1032_v3 = vpack.c.bf16 %v422_v59, %v418_v55  ;;  %v424_v4 = vmul.f32 %v1074_v58, %v400_v21 }
 0x118   :  { %1029 = vmatprep.subr.bf16.mxu0 %v1028_v63  ;;  %v1036_v5 = vpack.c.bf16 %v416_v1, %v412_v0 }
 0x119   :  { %1031 = vmatpush1.bf16.msra.mxu0 %v1030_v10  ;;  %v1040_v6 = vpack.c.bf16 %v424_v4, %v420_v2 }
 0x11a   :  { %1037 = vmatprep.subr.bf16.mxu1 %v1036_v5  ;;  %1033 = vmatprep.subr.bf16.mxu0 %v1032_v3 }
 0x11b   :  { %1039 = vmatpush1.bf16.msra.mxu1 %v1038_v23 }
 0x11c   :  { %1041 = vmatprep.subr.bf16.mxu1 %v1040_v6 }
 0x11d   :  { %1035 = vmatpush1.bf16.msra.mxu0 %v1034_v60 }
 0x11f   :  { %1043 = vmatpush1.bf16.msra.mxu1 %v1042_v62  ;;  %v447_v62 = vpop.permute.xlu1 %446 }
 0x120   :  { %1008 = vmatmul.mubr.msk.f32.vlgmr.msra.gmra.mrb[8].mxu0 %vm449_vm1, %v425_v8 }
 0x121   :  { %532 = vmatprep.mubr.f32.mxu0 %v1107_v7 }
 0x122   :  { %1012 = vmatmul.mubr.msk.f32.vlgmr.msra.gmra.mrb[8].mxu1 %vm449_vm1, %v425_v8 }
 0x123   :  { %621 = vmatprep.mubr.f32.mxu1 %v1107_v7 }
 0x124   :  { %1009 = vmatmul.mubr.msk.f32.gmra.mrb[10].mxu0 %vm449_vm1, %v426_v9 }
 0x125   :  { %538 = vmatprep.mubr.f32.mxu0 %v1107_v7 }
 0x126   :  { %1013 = vmatmul.mubr.msk.f32.gmra.mrb[10].mxu1 %vm449_vm1, %v426_v9 }
 0x127   :  { %627 = vmatprep.mubr.f32.mxu1 %v1107_v7 }
 0x128   :  { %1010 = vmatmul.mubr.msk.f32.gmra.mrb[12].mxu0 %vm449_vm1, %v427_v11 }
 0x129   :  { %544 = vmatprep.mubr.f32.mxu0 %v1107_v7 }
 0x12a   :  { %1014 = vmatmul.mubr.msk.f32.gmra.mrb[12].mxu1 %vm449_vm1, %v427_v11 }
 0x12b   :  { %633 = vmatprep.mubr.f32.mxu1 %v1107_v7 }
 0x12c   :  { %1011 = vmatmul.mubr.msk.f32.gmra.mrb[14].mxu0 %vm449_vm1, %v428_v12 }
 0x12d   :  { %886 = vmatprep.mubr.f32.mxu0 %v1107_v7 }
 0x12e   :  { %1015 = vmatmul.mubr.msk.f32.gmra.mrb[14].mxu1 %vm449_vm1, %v428_v12 }
 0x12f   :  { %963 = vmatprep.mubr.f32.mxu1 %v1107_v7 }
 0x1f3   :  { %v528_v14 = vpop.f32.mrb[8].mxu0 }
 0x1f4   :  { %v529_v15 = vadd.f32 %v528_v14, %v432_v13  ;;  %v530_v16 = vpop.f32.mrb[9].mxu0 }
 0x1f5   :  { %v617_v17 = vpop.f32.mrb[8].mxu1  ;;  %v531_v18 = vadd.f32 %v530_v16, %v432_v13 }
 0x1f6   :  { %v1368_v19 = vmax.f32 %v529_v15, 0.0  ;;  %v618_v20 = vadd.f32 %v617_v17, %v432_v13  ;;  %v619_v21 = vpop.f32.mrb[9].mxu1 }
 0x1f7   :  { %v1370_v22 = vmax.f32 %v531_v18, 0.0  ;;  %v620_v25 = vadd.f32 %v619_v21, %v432_v13  ;;  %v534_v43 = vpop.f32.mrb[10].mxu0 }
 0x1f8   :  { %v1372_v26 = vmax.f32 %v618_v20, 0.0  ;;  %v535_v27 = vadd.f32 %v534_v43, %v437_v41  ;;  %v536_v46 = vpop.f32.mrb[11].mxu0  ;;  %v696_v32 = vmul.f32 %v1368_v19, %v1368_v19 }
 0x1f9   :  { %v1374_v28 = vmax.f32 %v620_v25, 0.0  ;;  %v623_v30 = vpop.f32.mrb[10].mxu1  ;;  %v537_v31 = vadd.f32 %v536_v46, %v437_v41  ;;  %v697_v47 = vmul.f32 %v1370_v22, %v1370_v22 }
 0x1fa   :  { %v1380_v40 = vmax.f32 %v535_v27, 0.0  ;;  %v624_v33 = vadd.f32 %v623_v30, %v437_v41  ;;  %v625_v34 = vpop.f32.mrb[11].mxu1  ;;  %v698_v35 = vmul.f32 %v1372_v26, %v1372_v26 }
 0x1fb   :  { %v699_v42 = vmul.f32 %v1374_v28, %v1374_v28  ;;  %v1386_v37 = vmax.f32 %v537_v31, 0.0  ;;  %v626_v61 = vadd.f32 %v625_v34, %v437_v41  ;;  %v540_v36 = vpop.f32.mrb[12].mxu0 }
 0x1fc   :  { %v656_v52 = vadd.f32 %v1380_v40, %v1368_v19  ;;  %v700_v39 = vmul.f32 %v1380_v40, %v1380_v40  ;;  %v1392_v38 = vmax.f32 %v624_v33, 0.0  ;;  %v541_v44 = vadd.f32 %v540_v36, %v442_v57  ;;  %v542_v45 = vpop.f32.mrb[13].mxu0 }
 0x1fd   :  { %v665_v56 = vadd.f32 %v1386_v37, %v1370_v22  ;;  %v701_v48 = vmul.f32 %v1386_v37, %v1386_v37  ;;  %v1398_v24 = vmax.f32 %v626_v61, 0.0  ;;  %v629_v49 = vpop.f32.mrb[12].mxu1  ;;  %v543_v50 = vadd.f32 %v542_v45, %v442_v57 }
 0x1fe   :  { %v712_v51 = vadd.f32 %v700_v39, %v696_v32  ;;  %v674_v53 = vadd.f32 %v1392_v38, %v1372_v26  ;;  %v702_v29 = vmul.f32 %v1392_v38, %v1392_v38  ;;  %v1404_v54 = vmax.f32 %v541_v44, 0.0  ;;  %v631_v10 = vpop.f32.mrb[13].mxu1 }
 0x1ff   :  { %v721_v55 = vadd.f32 %v701_v48, %v697_v47  ;;  %v683_v58 = vadd.f32 %v1398_v24, %v1374_v28  ;;  %v703_v23 = vmul.f32 %v1398_v24, %v1398_v24  ;;  %v630_v59 = vadd.f32 %v629_v49, %v442_v57  ;;  %v546_v60 = vpop.f32.mrb[14].mxu0 }
 0x200   :  { %v730_v63 = vadd.f32 %v702_v29, %v698_v35  ;;  %v657_v0 = vadd.f32 %v656_v52, %v1404_v54  ;;  %v704_v1 = vmul.f32 %v1404_v54, %v1404_v54  ;;  %v1413_v2 = vmax.f32 %v543_v50, 0.0  ;;  %v548_v3 = vpop.f32.mrb[15].mxu0 }
 0x201   :  { %v739_v4 = vadd.f32 %v703_v23, %v699_v42  ;;  %v1415_v5 = vmax.f32 %v630_v59, 0.0  ;;  %v632_v6 = vadd.f32 %v631_v10, %v442_v57  ;;  %v547_v8 = vadd.f32 %v546_v60, %v447_v62  ;;  %v635_v9 = vpop.f32.mrb[14].mxu1 }
 0x202   :  { %v713_v11 = vadd.f32 %v712_v51, %v704_v1  ;;  %v666_v12 = vadd.f32 %v665_v56, %v1413_v2  ;;  %v705_v13 = vmul.f32 %v1413_v2, %v1413_v2  ;;  %v636_v14 = vadd.f32 %v635_v9, %v447_v62  ;;  %v637_v15 = vpop.f32.mrb[15].mxu1 }
 0x203   :  { %v675_v16 = vadd.f32 %v674_v53, %v1415_v5  ;;  %v706_v17 = vmul.f32 %v1415_v5, %v1415_v5  ;;  %v1423_v18 = vmax.f32 %v632_v6, 0.0  ;;  %v1425_v20 = vmax.f32 %v547_v8, 0.0 }
 0x204   :  { %v722_v21 = vadd.f32 %v721_v55, %v705_v13  ;;  %v1427_v41 = vmax.f32 %v636_v14, 0.0  ;;  %v549_v25 = vadd.f32 %v548_v3, %v447_v62  ;;  %v638_v43 = vadd.f32 %v637_v15, %v447_v62 }
 0x205   :  { %v731_v27 = vadd.f32 %v730_v63, %v706_v17  ;;  %v684_v46 = vadd.f32 %v683_v58, %v1423_v18  ;;  %v707_v30 = vmul.f32 %v1423_v18, %v1423_v18  ;;  %v658_v31 = vadd.f32 %v657_v0, %v1425_v20 }
 0x206   :  { %v708_v32 = vmul.f32 %v1425_v20, %v1425_v20  ;;  %v676_v47 = vadd.f32 %v675_v16, %v1427_v41  ;;  %v710_v33 = vmul.f32 %v1427_v41, %v1427_v41  ;;  %v1438_v34 = vmax.f32 %v549_v25, 0.0 }
 0x207   :  { %v740_v57 = vadd.f32 %v739_v4, %v707_v30  ;;  %v659_v35 = vrot.slane %v658_v31, 4  ;;  %v1440_v42 = vmax.f32 %v638_v43, 0.0 }
 0x208   :  { %v714_v61 = vadd.f32 %v713_v11, %v708_v32  ;;  %v677_v36 = vrot.slane %v676_v47, 4  ;;  %v732_v52 = vadd.f32 %v731_v27, %v710_v33  ;;  %v667_v39 = vadd.f32 %v666_v12, %v1438_v34 }
 0x209   :  { %v660_v44 = vadd.f32 %v659_v35, %v658_v31  ;;  %v709_v45 = vmul.f32 %v1438_v34, %v1438_v34  ;;  %v685_v56 = vadd.f32 %v684_v46, %v1440_v42  ;;  %v711_v48 = vmul.f32 %v1440_v42, %v1440_v42 }
 0x20a   :  { %v715_v49 = vrot.slane %v714_v61, 4  ;;  %v678_v50 = vadd.f32 %v677_v36, %v676_v47  ;;  %v733_v51 = vrot.slane %v732_v52, 4  ;;  %v668_v53 = vrot.slane %v667_v39, 4 }
 0x20b   :  { %v661_v29 = vrot.slane %v660_v44, 2  ;;  %v723_v10 = vadd.f32 %v722_v21, %v709_v45  ;;  %v686_v55 = vrot.slane %v685_v56, 4  ;;  %v741_v58 = vadd.f32 %v740_v57, %v711_v48 }
 0x20c   :  { %v716_v23 = vadd.f32 %v715_v49, %v714_v61  ;;  %v679_v59 = vrot.slane %v678_v50, 2  ;;  %v734_v60 = vadd.f32 %v733_v51, %v732_v52  ;;  %v669_v62 = vadd.f32 %v668_v53, %v667_v39 }
 0x20d   :  { %v662_v63 = vadd.f32 %v661_v29, %v660_v44  ;;  %v724_v0 = vrot.slane %v723_v10, 4  ;;  %v687_v1 = vadd.f32 %v686_v55, %v685_v56  ;;  %v742_v3 = vrot.slane %v741_v58, 4 }
 0x20e   :  { %v717_v4 = vrot.slane %v716_v23, 2  ;;  %v680_v6 = vadd.f32 %v679_v59, %v678_v50  ;;  %v735_v8 = vrot.slane %v734_v60, 2  ;;  %v670_v9 = vrot.slane %v669_v62, 2 }
 0x20f   :  { %v663_v11 = vrot.slane %v662_v63, 1  ;;  %v725_v12 = vadd.f32 %v724_v0, %v723_v10  ;;  %v688_v13 = vrot.slane %v687_v1, 2  ;;  %v743_v14 = vadd.f32 %v742_v3, %v741_v58 }
 0x210   :  { %v718_v15 = vadd.f32 %v717_v4, %v716_v23  ;;  %v681_v16 = vrot.slane %v680_v6, 1  ;;  %v736_v17 = vadd.f32 %v735_v8, %v734_v60  ;;  %v671_v21 = vadd.f32 %v670_v9, %v669_v62 }
 0x211   :  { %v664_v25 = vadd.f32 %v663_v11, %v662_v63  ;;  %v726_v43 = vrot.slane %v725_v12, 2  ;;  %v689_v27 = vadd.f32 %v688_v13, %v687_v1  ;;  %v744_v46 = vrot.slane %v743_v14, 2 }
 0x212   :  { %v719_v30 = vrot.slane %v718_v15, 1  ;;  %v682_v31 = vadd.f32 %v681_v16, %v680_v6  ;;  %v737_v32 = vrot.slane %v736_v17, 1  ;;  %v672_v47 = vrot.slane %v671_v21, 1 }
 0x213   :  { %v692_v33 = vmul.f32 0.03125, %v664_v25  ;;  %v727_v57 = vadd.f32 %v726_v43, %v725_v12  ;;  %v690_v35 = vrot.slane %v689_v27, 1  ;;  %v745_v61 = vadd.f32 %v744_v46, %v743_v14 }
 0x214   :  { %v720_v36 = vadd.f32 %v719_v30, %v718_v15  ;;  %v694_v52 = vmul.f32 0.03125, %v682_v31  ;;  %v738_v39 = vadd.f32 %v737_v32, %v736_v17  ;;  %v673_v44 = vadd.f32 %v672_v47, %v671_v21 }
 0x215   :  { %v752_v45 = vmul.f32 %v692_v33, %v692_v33  ;;  %v776_v56 = vsub.f32 %v1425_v20, %v692_v33  ;;  %v728_v48 = vrot.slane %v727_v57, 1  ;;  %v691_v49 = vadd.f32 %v690_v35, %v689_v27 }
 0x216   :  { %v748_v50 = vmul.f32 0.03125, %v720_v36  ;;  %v750_v51 = vmul.f32 0.03125, %v738_v39  ;;  %v754_v53 = vmul.f32 %v694_v52, %v694_v52  ;;  %v778_v29 = vsub.f32 %v1427_v41, %v694_v52 }
 0x217   :  { %v693_v10 = vmul.f32 0.03125, %v673_v44  ;;  %v729_v55 = vadd.f32 %v728_v48, %v727_v57  ;;  %v1450_v58 = vmul.f32 0.03125, %v691_v49  ;;  %v746_v23 = vrot.slane %v745_v61, 1 }
 0x218   :  { %v756_v59 = vsub.f32 %v748_v50, %v752_v45  ;;  %v758_v60 = vsub.f32 %v750_v51, %v754_v53  ;;  %v764_v62 = vsub.f32 %v1368_v19, %v692_v33  ;;  %v768_v63 = vsub.f32 %v1380_v40, %v692_v33 }
 0x219   :  { %v749_v0 = vmul.f32 0.03125, %v729_v55  ;;  %v753_v20 = vmul.f32 %v693_v10, %v693_v10  ;;  %v777_v1 = vsub.f32 %v1438_v34, %v693_v10  ;;  %v747_v3 = vadd.f32 %v746_v23, %v745_v61  ;;  %v805_v55 = vld [vmem:[%s1501_s5 + $0x8] sm:$0xff] }
 0x21a   :  { %v760_v4 = vmax.f32 %v756_v59, 0.0  ;;  %v762_v6 = vmax.f32 %v758_v60, 0.0  ;;  %v755_v41 = vmul.f32 %v1450_v58, %v1450_v58  ;;  %v779_v8 = vsub.f32 %v1440_v42, %v1450_v58 }
 0x21b   :  { %v757_v9 = vsub.f32 %v749_v0, %v753_v20  ;;  %v751_v11 = vmul.f32 0.03125, %v747_v3  ;;  %v765_v12 = vsub.f32 %v1370_v22, %v693_v10  ;;  %v769_v19 = vsub.f32 %v1386_v37, %v693_v10 }
 0x21c   :  { %v780_v40 = vadd.f32 1e-05, %v760_v4  ;;  %v782_v13 = vadd.f32 1e-05, %v762_v6  ;;  %v767_v34 = vsub.f32 %v1374_v28, %v1450_v58  ;;  %v771_v14 = vsub.f32 %v1398_v24, %v1450_v58 }
 0x21d   :  { %v761_v15 = vmax.f32 %v757_v9, 0.0  ;;  %v759_v16 = vsub.f32 %v751_v11, %v755_v41  ;;  %v766_v17 = vsub.f32 %v1372_v26, %v694_v52  ;;  %v770_v42 = vsub.f32 %v1392_v38, %v694_v52 }
 0x21e   :  { %1075 = vrsqrt.f32 %v780_v40  ;;  %v773_v21 = vsub.f32 %v1413_v2, %v693_v10  ;;  %v775_v22 = vsub.f32 %v1423_v18, %v1450_v58  ;;  %v772_v37 = vsub.f32 %v1404_v54, %v692_v33  ;;  %v804_v10 = vld [vmem:[%s1501_s5] sm:$0xff]  ;;  %v809_v58 = vpop.permute.xlu0 %808  ;;  %s1109_s5 = smov [#allocation2]  }
 0x21f   :  { %1077 = vrsqrt.f32 %v782_v13  ;;  %v781_v25 = vadd.f32 1e-05, %v761_v15  ;;  %v763_v28 = vmax.f32 %v759_v16, 0.0  ;;  %v774_v43 = vsub.f32 %v1415_v5, %v694_v52  ;;  %s989_s27 = sshll.u32 %s1109_s5, 4  ;;  %s990_s27 = int_to_ptr.vmem [resolvable:$true] %s989_s27 }
 0x220   :  { %s1083_s28 = scalar_lea.vmem %s990_s27, 1024  ;;  %p1088_p1 = scmp.lt.s32.totalorder %s990_s27, %s990_s27 }
 0x221   :  { %1079 = vrsqrt.f32 %v781_v25  ;;  %v783_v24 = vadd.f32 1e-05, %v763_v28  ;;  %p1084_p0 = scmp.ne.s32.totalorder %s990_s27, %s1083_s28  ;;  %p1089_p2 = scmp.lt.s32.totalorder %s1083_s28, %s1083_s28 }
 0x223   :  { %1081 = vrsqrt.f32 %v783_v24  ;;  %p1090_p3 = por %p1089_p2, %p1088_p1 }
 0x225   :  { %p1091_p4 = pnand %p1090_p3, %p1084_p0 }
 0x228   :  { %v1076_v27 = vpop.eup %1075 }
 0x229   :  { %v1078_v26 = vpop.eup %1077  ;;  %v800_v46 = vmul.f32 %v1076_v27, %v776_v56  ;;  %v788_v38 = vmul.f32 %v1076_v27, %v764_v62  ;;  %v792_v30 = vmul.f32 %v1076_v27, %v768_v63  ;;  %v796_v31 = vmul.f32 %v1076_v27, %v772_v37 }
 0x22a   :  { %v802_v2 = vmul.f32 %v1078_v26, %v778_v29  ;;  %v790_v32 = vmul.f32 %v1078_v26, %v766_v17  ;;  %v794_v47 = vmul.f32 %v1078_v26, %v770_v42  ;;  %v798_v18 = vmul.f32 %v1078_v26, %v774_v43 }
 0x22b   :  { %v1080_v57 = vpop.eup %1079  ;;  %v1046_v54 = vpack.c.bf16 %v792_v30, %v788_v38  ;;  %v1050_v33 = vpack.c.bf16 %v800_v46, %v796_v31 }
 0x22c   :  { %v789_v35 = vmul.f32 %v1080_v57, %v765_v12  ;;  %v793_v61 = vmul.f32 %v1080_v57, %v769_v19  ;;  %v1054_v36 = vpack.c.bf16 %v794_v47, %v790_v32  ;;  %v797_v5 = vmul.f32 %v1080_v57, %v773_v21 }
 0x22d   :  { %v1082_v52 = vpop.eup %1081  ;;  %v801_v39 = vmul.f32 %v1080_v57, %v777_v1  ;;  %v1058_v44 = vpack.c.bf16 %v802_v2, %v798_v18  ;;  %v814_v1 = vpop.permute.xlu1 %813 }
 0x22e   :  { %v1044_v45 = vpack.c.bf16 %v793_v61, %v789_v35  ;;  %v791_v48 = vmul.f32 %v1082_v52, %v767_v34  ;;  %v795_v56 = vmul.f32 %v1082_v52, %v771_v14  ;;  %v799_v49 = vmul.f32 %v1082_v52, %v775_v22 }
 0x22f   :  { %v1048_v50 = vpack.c.bf16 %v801_v39, %v797_v5  ;;  %v803_v51 = vmul.f32 %v1082_v52, %v779_v8 }
 0x230   :  { %1045 = vmatprep.subr.bf16.mxu0 %v1044_v45  ;;  %v1052_v53 = vpack.c.bf16 %v795_v56, %v791_v48 }
 0x231   :  { %1047 = vmatpush1.bf16.msra.mxu0 %v1046_v54  ;;  %v1056_v29 = vpack.c.bf16 %v803_v51, %v799_v49 }
 0x232   :  { %1053 = vmatprep.subr.bf16.mxu1 %v1052_v53  ;;  %1049 = vmatprep.subr.bf16.mxu0 %v1048_v50 }
 0x233   :  { %1055 = vmatpush1.bf16.msra.mxu1 %v1054_v36 }
 0x234   :  { %1057 = vmatprep.subr.bf16.mxu1 %v1056_v29 }
 0x235   :  { %1051 = vmatpush1.bf16.msra.mxu0 %v1050_v33 }
 0x237   :  { %1059 = vmatpush1.bf16.msra.mxu1 %v1058_v44 }
 0x238   :  { %1016 = vmatmul.mubr.msk.f32.vlgmr.msra.gmra.mrb[16].mxu0 %vm449_vm1, %v804_v10 }
 0x239   :  { %892 = vmatprep.mubr.f32.mxu0 %v1107_v7 }
 0x23a   :  { %1018 = vmatmul.mubr.msk.f32.vlgmr.msra.gmra.mrb[16].mxu1 %vm449_vm1, %v804_v10 }
 0x23b   :  { %969 = vmatprep.mubr.f32.mxu1 %v1107_v7 }
 0x23c   :  { %1017 = vmatmul.mubr.msk.f32.gmra.mrb[18].mxu0 %vm449_vm1, %v805_v55 }
 0x23e   :  { %1019 = vmatmul.mubr.msk.f32.gmra.mrb[18].mxu1 %vm449_vm1, %v805_v55 }
 0x30b   :  { %v888_v23 = vpop.f32.mrb[16].mxu0 }
 0x30c   :  { %v889_v59 = vadd.f32 %v888_v23, %v809_v58  ;;  %v890_v60 = vpop.f32.mrb[17].mxu0 }
 0x30d   :  { %v965_v62 = vpop.f32.mrb[16].mxu1  ;;  %v891_v63 = vadd.f32 %v890_v60, %v809_v58 }
 0x30e   :  { %976 = vst [vmem:[#allocation2] sm:$0xff] %v889_v59  ;;  %v966_v0 = vadd.f32 %v965_v62, %v809_v58  ;;  %v967_v20 = vpop.f32.mrb[17].mxu1 }
 0x30f   :  { %977 = vst [vmem:[#allocation2 + $0x8] sm:$0xff] %v891_v63  ;;  %v968_v3 = vadd.f32 %v967_v20, %v809_v58  ;;  %v894_v4 = vpop.f32.mrb[18].mxu0 }
 0x310   :  { %978 = vst [vmem:[#allocation2 + $0x10] sm:$0xff] %v966_v0  ;;  %v895_v6 = vadd.f32 %v894_v4, %v814_v1  ;;  %v896_v7 = vpop.f32.mrb[19].mxu0 }
 0x311   :  { %979 = vst [vmem:[#allocation2 + $0x18] sm:$0xff] %v968_v3  ;;  %v971_v41 = vpop.f32.mrb[18].mxu1  ;;  %v897_v8 = vadd.f32 %v896_v7, %v814_v1 }
 0x312   :  { %980 = vst [vmem:[#allocation2 + $0x20] sm:$0xff] %v895_v6  ;;  %v972_v9 = vadd.f32 %v971_v41, %v814_v1  ;;  %v973_v11 = vpop.f32.mrb[19].mxu1 }
 0x313   :  { %981 = vst [vmem:[#allocation2 + $0x28] sm:$0xff] %v897_v8  ;;  %v974_v12 = vadd.f32 %v973_v11, %v814_v1 }
 0x314   :  { %982 = vst [vmem:[#allocation2 + $0x30] sm:$0xff] %v972_v9 }
 0x315   :  { %983 = vst [vmem:[#allocation2 + $0x38] sm:$0xff] %v974_v12 }
 0x316   :  { %1094 = shalt.err (!%p1091_p4)
}
 0x317   :  { %s1095_s30 = scalar_lea.hbm %s1503_s7, 1024 }
 0x318   :  { %p1096_p5 = scmp.ne.s32.totalorder %s1503_s7, %s1095_s30  ;;  %p1099_p6 = scmp.lt.u32.totalorder %s1095_s30, %s1503_s7 }
 0x31a   :  { %p1101_p7 = pnand %p1099_p6, %p1096_p5 }
 0x31c   :  { %1104 = shalt.err (!%p1101_p7)
}
 0x31d   :  { %s1110_s12 = smov 512   ;;  %s1111_s13 = smov 32  }
 0x31e   :  { %995 = dma.vmem_to_hbm [thread:$0]  %s990_s27, 1024, %s1503_s7, [#allocation3], %s1110_s12, %s1110_s12, %s1111_s13  }
 0x31f   :  { %1105 = dma.done.wait [#allocation3], 1024  }
 0x320   :  { %1106 = vsyncadd [#allocation3], 4294966272 }
 0x321   :  { %999 = vsyncpa [#allocation3], 1 }

</bundles_post_ra>
